<compile_context>
chip_gen: v7x
topology: tpu7x:2x2x1
jax: 0.10.0
libtpu: 0.0.40
codegen_flags: <defaults>
</compile_context>

<pallas_src>
import functools

import jax
import jax.numpy as jnp
from jax import lax
from jax.experimental import pallas as pl
from jax.experimental.pallas import tpu as pltpu

_NEG_BIG = -1e30  # finite "-inf": avoids inf-inf NaNs in the online softmax


def _round_up(x, m):
    return ((x + m - 1) // m) * m


def _clip_loss_kernel(scale_ref, img_ref, txt_ref, out_ref,
                      mcol_ref, lcol_ref, mrow_ref, lrow_ref, acc_ref,
                      *, batch, tile_r, tile_c, pad_rows, pad_cols):
    i = pl.program_id(0)          # row-tile index
    j = pl.program_id(1)          # column-tile index
    nr = pl.num_programs(0)
    nc = pl.num_programs(1)

    @pl.when(jnp.logical_and(i == 0, j == 0))
    def _init_acc():
        acc_ref[...] = jnp.zeros_like(acc_ref)

    @pl.when(i == 0)
    def _init_col():
        mcol_ref[j] = jnp.full((1, tile_c), _NEG_BIG, dtype=jnp.float32)
        lcol_ref[j] = jnp.zeros((1, tile_c), dtype=jnp.float32)

    @pl.when(j == 0)
    def _init_row():
        mrow_ref[...] = jnp.full_like(mrow_ref, _NEG_BIG)
        lrow_ref[...] = jnp.zeros_like(lrow_ref)

    scale = scale_ref[0, 0]

    # (tile_r, tile_c) block of logits: MXU matmul in the operands' native
    # (typically bf16) dtype, f32 accumulation, scale applied post-matmul.
    s = lax.dot_general(
        img_ref[...], txt_ref[...],
        dimension_numbers=(((1,), (1,)), ((), ())),
        preferred_element_type=jnp.float32,
    ) * scale                                                   # f32

    row_start = pl.multiple_of(i * tile_r, tile_r)
    col_start = pl.multiple_of(j * tile_c, tile_c)
    row_ids = row_start + lax.broadcasted_iota(jnp.int32, (tile_r, 1), 0)
    col_ids = col_start + lax.broadcasted_iota(jnp.int32, (1, tile_c), 1)
    row_valid = row_ids < batch
    col_valid = col_ids < batch

    # ---- correct-class (diagonal) logits, taken straight from this block ----
    @pl.when(jnp.logical_and(row_start < col_start + tile_c,
                             col_start < row_start + tile_r))
    def _diag():
        rid = row_start + lax.broadcasted_iota(jnp.int32, (tile_r, tile_c), 0)
        cid = col_start + lax.broadcasted_iota(jnp.int32, (tile_r, tile_c), 1)
        dmask = rid == cid
        if pad_rows or pad_cols:
            dmask = jnp.logical_and(dmask, rid < batch)
        acc_ref[...] = acc_ref[...] - jnp.sum(
            jnp.where(dmask, s, 0.0), keepdims=True)

    if pad_rows or pad_cols:
        s_m = jnp.where(jnp.logical_and(row_valid, col_valid), s, _NEG_BIG)
    else:
        s_m = s

    # ---- image -> text: online row log-sum-exp across column tiles ----
    mr_old = mrow_ref[...]                                       # (tile_r, 1)
    mr_new = jnp.maximum(mr_old, jnp.max(s_m, axis=1, keepdims=True))
    lrow_ref[...] = (lrow_ref[...] * jnp.exp(mr_old - mr_new)
                     + jnp.sum(jnp.exp(s_m - mr_new), axis=1, keepdims=True))
    mrow_ref[...] = mr_new

    # ---- text -> image: online column log-sum-exp across row tiles ----
    mc_old = mcol_ref[j]                                         # (1, tile_c)
    mc_new = jnp.maximum(mc_old, jnp.max(s_m, axis=0, keepdims=True))
    lcol_ref[j] = (lcol_ref[j] * jnp.exp(mc_old - mc_new)
                   + jnp.sum(jnp.exp(s_m - mc_new), axis=0, keepdims=True))
    mcol_ref[j] = mc_new

    # ---- finalize this row tile once its last column tile has been seen ----
    @pl.when(j == nc - 1)
    def _fin_row():
        lse_row = jnp.log(lrow_ref[...]) + mrow_ref[...]
        if pad_rows:
            lse_row = jnp.where(row_valid, lse_row, 0.0)
        acc_ref[...] = acc_ref[...] + 0.5 * jnp.sum(lse_row, keepdims=True)

    # ---- finalize this column tile once its last row tile has been seen ----
    @pl.when(i == nr - 1)
    def _fin_col():
        lse_col = jnp.log(lcol_ref[j]) + mcol_ref[j]
        if pad_cols:
            lse_col = jnp.where(col_valid, lse_col, 0.0)
        acc_ref[...] = acc_ref[...] + 0.5 * jnp.sum(lse_col, keepdims=True)

    @pl.when(jnp.logical_and(i == nr - 1, j == nc - 1))
    def _write_out():
        out_ref[...] = acc_ref[...] / jnp.float32(batch)


def clip_contrastive_loss(image_features, text_features, logit_scale, *,
                          block_rows=256, block_cols=256, mxu_dtype=None):
    """Symmetric CLIP contrastive loss: 0.5 * (CE(img->txt) + CE(txt->img))."""
    B, D = image_features.shape
    assert text_features.shape == (B, D)

    # Feed the MXU bf16 when the caller passes f32 (single biggest lever on
    # v5e; also halves HBM traffic). Override with mxu_dtype=jnp.float32 for
    # bit-accurate f32 matmul.
    if mxu_dtype is None:
        mxu_dtype = (jnp.bfloat16 if image_features.dtype == jnp.float32
                     else image_features.dtype)
    mxu_dtype = jnp.dtype(mxu_dtype)
    if image_features.dtype != mxu_dtype:
        image_features = image_features.astype(mxu_dtype)
    if text_features.dtype != mxu_dtype:
        text_features = text_features.astype(mxu_dtype)

    # Native sublane tile for the MXU dtype (f32: 8, bf16: 16, int8/fp8: 32).
    sub_r = {4: 8, 2: 16, 1: 32}.get(mxu_dtype.itemsize, 8)
    tile_r = _round_up(min(block_rows, _round_up(B, sub_r)), sub_r)
    b_pad_r = _round_up(B, tile_r)
    # Column tile = lane dim of the logits block: keep it a multiple of 128.
    tile_c = _round_up(min(block_cols, _round_up(B, 128)), 128)
    b_pad_c = _round_up(B, tile_c)
    nr, nc = b_pad_r // tile_r, b_pad_c // tile_c

    img = image_features
    txt = text_features
    if b_pad_r != B:
        img = jnp.pad(img, ((0, b_pad_r - B), (0, 0)))
    if b_pad_c != B:
        txt = jnp.pad(txt, ((0, b_pad_c - B), (0, 0)))

    scale = jnp.asarray(logit_scale, dtype=jnp.float32).reshape(1, 1)

    kernel = functools.partial(
        _clip_loss_kernel, batch=B, tile_r=tile_r, tile_c=tile_c,
        pad_rows=(b_pad_r != B), pad_cols=(b_pad_c != B))

    # VMEM budget from the actual footprint (double-buffered operand tiles,
    # f32 block temporaries, online-softmax scratch) with generous headroom.
    itemsize = mxu_dtype.itemsize
    vmem_est = (2 * tile_r * D * itemsize            # image tile (double-buffered)
                + 2 * tile_c * D * itemsize          # text tile  (double-buffered)
                + 2 * nc * 8 * tile_c * 4            # column m/l scratch (padded)
                + 2 * tile_r * 128 * 4               # row m/l scratch (padded)
                + 12 * tile_r * tile_c * 4)          # f32 logits/exp temporaries
    vmem_limit = int(min(64 << 20, max(32 << 20, 2 * vmem_est)))

    cost = pl.CostEstimate(
        flops=2 * b_pad_r * b_pad_c * D,
        transcendentals=2 * b_pad_r * b_pad_c,
        bytes_accessed=(b_pad_r * D + nr * b_pad_c * D) * itemsize + 4,
    )

    out = pl.pallas_call(
        kernel,
        out_shape=jax.ShapeDtypeStruct((1, 1), jnp.float32),
        grid_spec=pltpu.PrefetchScalarGridSpec(
            num_scalar_prefetch=0,
            grid=(nr, nc),
            in_specs=[
                pl.BlockSpec(memory_space=pltpu.SMEM),            # logit_scale (1,1)
                pl.BlockSpec((tile_r, D), lambda i, j: (i, 0)),   # image row tile
                pl.BlockSpec((tile_c, D), lambda i, j: (j, 0)),   # text column tile
            ],
            out_specs=pl.BlockSpec((1, 1), lambda i, j: (0, 0)),
            scratch_shapes=[
                pltpu.VMEM((nc, 1, tile_c), jnp.float32),  # running column max
                pltpu.VMEM((nc, 1, tile_c), jnp.float32),  # running column exp-sum
                pltpu.VMEM((tile_r, 1), jnp.float32),      # running row max
                pltpu.VMEM((tile_r, 1), jnp.float32),      # running row exp-sum
                pltpu.VMEM((1, 1), jnp.float32),           # loss accumulator
            ],
        ),
        compiler_params=pltpu.CompilerParams(
            # both online-softmax carries cross grid steps -> sequential axes
            dimension_semantics=("arbitrary", "arbitrary"),
            vmem_limit_bytes=vmem_limit,
        ),
        cost_estimate=cost,
    )(scale, img, txt)
    return out[0, 0]


def _reference_loss(image_features, text_features, logit_scale):
    logits = (jnp.float32(logit_scale)
              * image_features.astype(jnp.float32)
              @ text_features.astype(jnp.float32).T)
    labels = jnp.arange(image_features.shape[0])

    def ce(lg):
        lse = jax.scipy.special.logsumexp(lg, axis=1)
        correct = lg[jnp.arange(lg.shape[0]), labels]
        return jnp.mean(lse - correct)

    return 0.5 * (ce(logits) + ce(logits.T))


if __name__ == "__main__":
    key = jax.random.PRNGKey(0)
    ks = jax.random.split(key, 8)

    def make(kk, b, d, dtype=jnp.float32):
        x = jax.random.normal(kk, (b, d), dtype=jnp.float32)
        x = x / jnp.linalg.norm(x, axis=-1, keepdims=True)
        return x.astype(dtype)

    # Case 1: tiny batch, exact f32 MXU path, single tile per grid axis,
    # column padding exercised. Tight tolerance.
    scale1 = jnp.exp(jnp.float32(2.6592))   # CLIP init: exp(log(1/0.07))
    img1, txt1 = make(ks[0], 8, 32), make(ks[1], 8, 32)
    loss1 = jax.block_until_ready(
        clip_contrastive_loss(img1, txt1, scale1, mxu_dtype=jnp.float32))
    ref1 = _reference_loss(img1, txt1, scale1)
    assert jnp.allclose(loss1, ref1, atol=1e-4, rtol=1e-4), (loss1, ref1)

    # Case 2: two row tiles, no padding anywhere, exact f32 MXU path.
    img2, txt2 = make(ks[2], 128, 32), make(ks[3], 128, 32)
    loss2 = jax.block_until_ready(
        clip_contrastive_loss(img2, txt2, scale1, block_rows=64,
                              mxu_dtype=jnp.float32))
    ref2 = _reference_loss(img2, txt2, scale1)
    assert jnp.allclose(loss2, ref2, atol=1e-4, rtol=1e-4), (loss2, ref2)

    # Case 3: multiple row AND column tiles with padding in both dims,
    # default bf16 MXU feed -> looser tolerance (bf16 rounding of operands).
    scale3 = jnp.float32(5.0)
    img3, txt3 = make(ks[4], 200, 64), make(ks[5], 200, 64)
    loss3 = jax.block_until_ready(
        clip_contrastive_loss(img3, txt3, scale3, block_rows=64,
                              block_cols=128))
    ref3 = _reference_loss(img3, txt3, scale3)
    assert jnp.allclose(loss3, ref3, atol=2e-2, rtol=2e-2), (loss3, ref3)

    # Case 4: native bf16 inputs (bf16 sublane tiling / dtype path).
    img4 = make(ks[6], 48, 64, jnp.bfloat16)
    txt4 = make(ks[7], 48, 64, jnp.bfloat16)
    loss4 = jax.block_until_ready(clip_contrastive_loss(img4, txt4, scale3))
    ref4 = _reference_loss(img4, txt4, scale3)
    assert jnp.allclose(loss4, ref4, atol=2e-2, rtol=2e-2), (loss4, ref4)

    print("KERNEL_OK")
</pallas_src>

<mosaic_0001>
module attributes {stable_mosaic.version = 11 : i64} {
  func.func @_clip_loss_kernel(%arg0: i32, %arg1: i32, %arg2: memref<1x1xf32, #tpu.memory_space<smem>>, %arg3: memref<8x32xf32, #tpu.memory_space<vmem>>, %arg4: memref<128x32xf32, #tpu.memory_space<vmem>>, %arg5: memref<1x1xf32, #tpu.memory_space<vmem>>, %arg6: memref<1x1x128xf32, #tpu.memory_space<vmem>>, %arg7: memref<1x1x128xf32, #tpu.memory_space<vmem>>, %arg8: memref<8x1xf32, #tpu.memory_space<vmem>>, %arg9: memref<8x1xf32, #tpu.memory_space<vmem>>, %arg10: memref<1x1xf32, #tpu.memory_space<vmem>>) attributes {dimension_semantics = [#tpu.dimension_semantics<arbitrary>, #tpu.dimension_semantics<arbitrary>], iteration_bounds = array<i64: 1, 1>, scalar_prefetch = 0 : i64, scratch_operands = 5 : i64, tpu.core_type = #tpu.core_type<tc>, window_params = [{transform_indices = @transform_0, window_bounds = array<i64: 1, 1>}, {transform_indices = @transform_1, window_bounds = array<i64: 8, 32>}, {transform_indices = @transform_2, window_bounds = array<i64: 128, 32>}, {pipeline_mode = #tpu.pipeline_mode<synchronous>, transform_indices = @transform_3, window_bounds = array<i64: 1, 1>}]} {
    %c0_i32 = arith.constant 0 : i32
    %0 = arith.cmpi eq, %arg0, %c0_i32 : i32
    %c0_i32_0 = arith.constant 0 : i32
    %1 = arith.cmpi eq, %arg1, %c0_i32_0 : i32
    %2 = arith.andi %0, %1 : i1
    %3 = arith.extui %2 : i1 to i32
    %c0_i32_1 = arith.constant 0 : i32
    %4 = arith.cmpi ne, %3, %c0_i32_1 : i32
    scf.if %4 {
      %cst_44 = arith.constant 0.000000e+00 : f32
      %96 = vector.broadcast %cst_44 : f32 to vector<1x1xf32>
      %c0_45 = arith.constant 0 : index
      %c0_46 = arith.constant 0 : index
      %97 = vector.load %arg10[%c0_45, %c0_46] : memref<1x1xf32, #tpu.memory_space<vmem>>, vector<1x1xf32>
      tpu.vector_store %arg10[%c0_45, %c0_46], %96 {strides = array<i32>} : memref<1x1xf32, #tpu.memory_space<vmem>>, vector<1x1xf32>,
    } else {
    }
    %c0_i32_2 = arith.constant 0 : i32
    %5 = arith.cmpi eq, %arg0, %c0_i32_2 : i32
    %6 = arith.extui %5 : i1 to i32
    %c0_i32_3 = arith.constant 0 : i32
    %7 = arith.cmpi ne, %6, %c0_i32_3 : i32
    scf.if %7 {
      %cst_44 = arith.constant -1.000000e+30 : f32
      %96 = vector.broadcast %cst_44 : f32 to vector<1x128xf32>
      %97 = arith.index_cast %arg1 : i32 to index
      %c0_45 = arith.constant 0 : index
      %c0_46 = arith.constant 0 : index
      %98 = vector.load %arg6[%97, %c0_45, %c0_46] : memref<1x1x128xf32, #tpu.memory_space<vmem>>, vector<1x1x128xf32>
      %99 = vector.shape_cast %98 : vector<1x1x128xf32> to vector<1x128xf32>
      %100 = vector.shape_cast %96 : vector<1x128xf32> to vector<1x1x128xf32>
      tpu.vector_store %arg6[%97, %c0_45, %c0_46], %100 {strides = array<i32>} : memref<1x1x128xf32, #tpu.memory_space<vmem>>, vector<1x1x128xf32>,
      %cst_47 = arith.constant 0.000000e+00 : f32
      %101 = vector.broadcast %cst_47 : f32 to vector<1x128xf32>
      %102 = arith.index_cast %arg1 : i32 to index
      %c0_48 = arith.constant 0 : index
      %c0_49 = arith.constant 0 : index
      %103 = vector.load %arg7[%102, %c0_48, %c0_49] : memref<1x1x128xf32, #tpu.memory_space<vmem>>, vector<1x1x128xf32>
      %104 = vector.shape_cast %103 : vector<1x1x128xf32> to vector<1x128xf32>
      %105 = vector.shape_cast %101 : vector<1x128xf32> to vector<1x1x128xf32>
      tpu.vector_store %arg7[%102, %c0_48, %c0_49], %105 {strides = array<i32>} : memref<1x1x128xf32, #tpu.memory_space<vmem>>, vector<1x1x128xf32>,
    } else {
    }
    %c0_i32_4 = arith.constant 0 : i32
    %8 = arith.cmpi eq, %arg1, %c0_i32_4 : i32
    %9 = arith.extui %8 : i1 to i32
    %c0_i32_5 = arith.constant 0 : i32
    %10 = arith.cmpi ne, %9, %c0_i32_5 : i32
    scf.if %10 {
      %cst_44 = arith.constant -1.000000e+30 : f32
      %96 = vector.broadcast %cst_44 : f32 to vector<8x1xf32>
      %c0_45 = arith.constant 0 : index
      %c0_46 = arith.constant 0 : index
      %97 = vector.load %arg8[%c0_45, %c0_46] : memref<8x1xf32, #tpu.memory_space<vmem>>, vector<8x1xf32>
      tpu.vector_store %arg8[%c0_45, %c0_46], %96 {strides = array<i32>} : memref<8x1xf32, #tpu.memory_space<vmem>>, vector<8x1xf32>,
      %cst_47 = arith.constant 0.000000e+00 : f32
      %98 = vector.broadcast %cst_47 : f32 to vector<8x1xf32>
      %c0_48 = arith.constant 0 : index
      %c0_49 = arith.constant 0 : index
      %99 = vector.load %arg9[%c0_48, %c0_49] : memref<8x1xf32, #tpu.memory_space<vmem>>, vector<8x1xf32>
      tpu.vector_store %arg9[%c0_48, %c0_49], %98 {strides = array<i32>} : memref<8x1xf32, #tpu.memory_space<vmem>>, vector<8x1xf32>,
    } else {
    }
    %c0 = arith.constant 0 : index
    %c0_6 = arith.constant 0 : index
    %11 = memref.load %arg2[%c0, %c0_6] : memref<1x1xf32, #tpu.memory_space<smem>>
    %c0_7 = arith.constant 0 : index
    %c0_8 = arith.constant 0 : index
    %12 = vector.load %arg3[%c0_7, %c0_8] : memref<8x32xf32, #tpu.memory_space<vmem>>, vector<8x32xf32>
    %c0_9 = arith.constant 0 : index
    %c0_10 = arith.constant 0 : index
    %13 = vector.load %arg4[%c0_9, %c0_10] : memref<128x32xf32, #tpu.memory_space<vmem>>, vector<128x32xf32>
    %cst = arith.constant dense<0.000000e+00> : vector<8x128xf32>
    %14 = tpu.matmul %12, %13, %cst {dimension_numbers = #tpu.dot_dimension_numbers<[1], [1], [0], [0], [0, 0, 1, 0], [], []>} : vector<8x32xf32>, vector<128x32xf32>, vector<8x128xf32> -> vector<8x128xf32>
    %15 = vector.broadcast %11 : f32 to vector<8x128xf32>
    %16 = arith.mulf %14, %15 : vector<8x128xf32>
    %c8_i32 = arith.constant 8 : i32
    %17 = arith.muli %arg0, %c8_i32 : i32
    %18 = tpu.assume_multiple %17, 8 : i32
    %c128_i32 = arith.constant 128 : i32
    %19 = arith.muli %arg1, %c128_i32 : i32
    %20 = tpu.assume_multiple %19, 128 : i32
    %21 = tpu.iota {dimensions = array<i32: 0>} : vector<8x1xi32>
    %22 = vector.broadcast %18 : i32 to vector<8x1xi32>
    %23 = arith.addi %22, %21 : vector<8x1xi32>
    %24 = tpu.iota {dimensions = array<i32: 1>} : vector<1x128xi32>
    %25 = vector.broadcast %20 : i32 to vector<1x128xi32>
    %26 = arith.addi %25, %24 : vector<1x128xi32>
    %c8_i32_11 = arith.constant 8 : i32
    %27 = vector.broadcast %c8_i32_11 : i32 to vector<8x1xi32>
    %28 = arith.cmpi slt, %23, %27 : vector<8x1xi32>
    %c8_i32_12 = arith.constant 8 : i32
    %29 = vector.broadcast %c8_i32_12 : i32 to vector<1x128xi32>
    %30 = arith.cmpi slt, %26, %29 : vector<1x128xi32>
    %c128_i32_13 = arith.constant 128 : i32
    %31 = arith.addi %20, %c128_i32_13 : i32
    %32 = arith.cmpi slt, %18, %31 : i32
    %c8_i32_14 = arith.constant 8 : i32
    %33 = arith.addi %18, %c8_i32_14 : i32
    %34 = arith.cmpi slt, %20, %33 : i32
    %35 = arith.andi %32, %34 : i1
    %36 = arith.extui %35 : i1 to i32
    %c0_i32_15 = arith.constant 0 : i32
    %37 = arith.cmpi ne, %36, %c0_i32_15 : i32
    scf.if %37 {
      %96 = tpu.iota {dimensions = array<i32: 0>} : vector<8x128xi32>
      %97 = vector.broadcast %18 : i32 to vector<8x128xi32>
      %98 = arith.addi %97, %96 : vector<8x128xi32>
      %99 = tpu.iota {dimensions = array<i32: 1>} : vector<8x128xi32>
      %100 = vector.broadcast %20 : i32 to vector<8x128xi32>
      %101 = arith.addi %100, %99 : vector<8x128xi32>
      %102 = arith.cmpi eq, %98, %101 : vector<8x128xi32>
      %c8_i32_44 = arith.constant 8 : i32
      %103 = vector.broadcast %c8_i32_44 : i32 to vector<8x128xi32>
      %104 = arith.cmpi slt, %98, %103 : vector<8x128xi32>
      %105 = arith.andi %102, %104 : vector<8x128xi1>
      %c0_45 = arith.constant 0 : index
      %c0_46 = arith.constant 0 : index
      %106 = vector.load %arg10[%c0_45, %c0_46] : memref<1x1xf32, #tpu.memory_space<vmem>>, vector<1x1xf32>
      %cst_47 = arith.constant 0.000000e+00 : f32
      %107 = vector.broadcast %cst_47 : f32 to vector<8x128xf32>
      %108 = arith.select %105, %16, %107 : vector<8x128xi1>, vector<8x128xf32>
      %109 = vector.shape_cast %108 : vector<8x128xf32> to vector<1x8x128xf32>
      %cst_48 = arith.constant dense<0.000000e+00> : vector<1xf32>
      %110 = vector.multi_reduction <add>, %109, %cst_48 [1, 2] : vector<1x8x128xf32> to vector<1xf32>
      %111 = vector.shape_cast %110 : vector<1xf32> to vector<1x1x1xf32>
      %112 = vector.extract %111[0, 0, 0] : f32 from vector<1x1x1xf32>
      %113 = vector.broadcast %112 : f32 to vector<1x1xf32>
      %114 = arith.subf %106, %113 : vector<1x1xf32>
      %c0_49 = arith.constant 0 : index
      %c0_50 = arith.constant 0 : index
      %115 = vector.load %arg10[%c0_49, %c0_50] : memref<1x1xf32, #tpu.memory_space<vmem>>, vector<1x1xf32>
      tpu.vector_store %arg10[%c0_49, %c0_50], %114 {strides = array<i32>} : memref<1x1xf32, #tpu.memory_space<vmem>>, vector<1x1xf32>,
    } else {
    }
    %38 = vector.broadcast %28 : vector<8x1xi1> to vector<8x128xi1>
    %39 = vector.broadcast %30 : vector<1x128xi1> to vector<8x128xi1>
    %40 = arith.andi %38, %39 : vector<8x128xi1>
    %cst_16 = arith.constant -1.000000e+30 : f32
    %41 = vector.broadcast %cst_16 : f32 to vector<8x128xf32>
    %42 = arith.select %40, %16, %41 : vector<8x128xi1>, vector<8x128xf32>
    %c0_17 = arith.constant 0 : index
    %c0_18 = arith.constant 0 : index
    %43 = vector.load %arg8[%c0_17, %c0_18] : memref<8x1xf32, #tpu.memory_space<vmem>>, vector<8x1xf32>
    %cst_19 = arith.constant dense<0xFF800000> : vector<8xf32>
    %44 = vector.multi_reduction <maximumf>, %42, %cst_19 [1] : vector<8x128xf32> to vector<8xf32>
    %45 = vector.shape_cast %44 : vector<8xf32> to vector<8x1xf32>
    %46 = arith.maximumf %43, %45 : vector<8x1xf32>
    %c0_20 = arith.constant 0 : index
    %c0_21 = arith.constant 0 : index
    %47 = vector.load %arg9[%c0_20, %c0_21] : memref<8x1xf32, #tpu.memory_space<vmem>>, vector<8x1xf32>
    %48 = arith.subf %43, %46 : vector<8x1xf32>
    %49 = math.exp %48 : vector<8x1xf32>
    %50 = arith.mulf %47, %49 : vector<8x1xf32>
    %51 = vector.broadcast %46 : vector<8x1xf32> to vector<8x128xf32>
    %52 = arith.subf %42, %51 : vector<8x128xf32>
    %53 = math.exp %52 : vector<8x128xf32>
    %cst_22 = arith.constant dense<0.000000e+00> : vector<8xf32>
    %54 = vector.multi_reduction <add>, %53, %cst_22 [1] : vector<8x128xf32> to vector<8xf32>
    %55 = vector.shape_cast %54 : vector<8xf32> to vector<8x1xf32>
    %56 = arith.addf %50, %55 : vector<8x1xf32>
    %c0_23 = arith.constant 0 : index
    %c0_24 = arith.constant 0 : index
    %57 = vector.load %arg9[%c0_23, %c0_24] : memref<8x1xf32, #tpu.memory_space<vmem>>, vector<8x1xf32>
    tpu.vector_store %arg9[%c0_23, %c0_24], %56 {strides = array<i32>} : memref<8x1xf32, #tpu.memory_space<vmem>>, vector<8x1xf32>,
    %c0_25 = arith.constant 0 : index
    %c0_26 = arith.constant 0 : index
    %58 = vector.load %arg8[%c0_25, %c0_26] : memref<8x1xf32, #tpu.memory_space<vmem>>, vector<8x1xf32>
    tpu.vector_store %arg8[%c0_25, %c0_26], %46 {strides = array<i32>} : memref<8x1xf32, #tpu.memory_space<vmem>>, vector<8x1xf32>,
    %59 = arith.index_cast %arg1 : i32 to index
    %c0_27 = arith.constant 0 : index
    %c0_28 = arith.constant 0 : index
    %60 = vector.load %arg6[%59, %c0_27, %c0_28] : memref<1x1x128xf32, #tpu.memory_space<vmem>>, vector<1x1x128xf32>
    %61 = vector.shape_cast %60 : vector<1x1x128xf32> to vector<1x128xf32>
    %cst_29 = arith.constant dense<0xFF800000> : vector<128xf32>
    %62 = vector.multi_reduction <maximumf>, %42, %cst_29 [0] : vector<8x128xf32> to vector<128xf32>
    %63 = vector.shape_cast %62 : vector<128xf32> to vector<1x128xf32>
    %64 = arith.maximumf %61, %63 : vector<1x128xf32>
    %65 = arith.index_cast %arg1 : i32 to index
    %c0_30 = arith.constant 0 : index
    %c0_31 = arith.constant 0 : index
    %66 = vector.load %arg7[%65, %c0_30, %c0_31] : memref<1x1x128xf32, #tpu.memory_space<vmem>>, vector<1x1x128xf32>
    %67 = vector.shape_cast %66 : vector<1x1x128xf32> to vector<1x128xf32>
    %68 = arith.subf %61, %64 : vector<1x128xf32>
    %69 = math.exp %68 : vector<1x128xf32>
    %70 = arith.mulf %67, %69 : vector<1x128xf32>
    %71 = vector.broadcast %64 : vector<1x128xf32> to vector<8x128xf32>
    %72 = arith.subf %42, %71 : vector<8x128xf32>
    %73 = math.exp %72 : vector<8x128xf32>
    %cst_32 = arith.constant dense<0.000000e+00> : vector<128xf32>
    %74 = vector.multi_reduction <add>, %73, %cst_32 [0] : vector<8x128xf32> to vector<128xf32>
    %75 = vector.shape_cast %74 : vector<128xf32> to vector<1x128xf32>
    %76 = arith.addf %70, %75 : vector<1x128xf32>
    %77 = arith.index_cast %arg1 : i32 to index
    %c0_33 = arith.constant 0 : index
    %c0_34 = arith.constant 0 : index
    %78 = vector.load %arg7[%77, %c0_33, %c0_34] : memref<1x1x128xf32, #tpu.memory_space<vmem>>, vector<1x1x128xf32>
    %79 = vector.shape_cast %78 : vector<1x1x128xf32> to vector<1x128xf32>
    %80 = vector.shape_cast %76 : vector<1x128xf32> to vector<1x1x128xf32>
    tpu.vector_store %arg7[%77, %c0_33, %c0_34], %80 {strides = array<i32>} : memref<1x1x128xf32, #tpu.memory_space<vmem>>, vector<1x1x128xf32>,
    %81 = arith.index_cast %arg1 : i32 to index
    %c0_35 = arith.constant 0 : index
    %c0_36 = arith.constant 0 : index
    %82 = vector.load %arg6[%81, %c0_35, %c0_36] : memref<1x1x128xf32, #tpu.memory_space<vmem>>, vector<1x1x128xf32>
    %83 = vector.shape_cast %82 : vector<1x1x128xf32> to vector<1x128xf32>
    %84 = vector.shape_cast %64 : vector<1x128xf32> to vector<1x1x128xf32>
    tpu.vector_store %arg6[%81, %c0_35, %c0_36], %84 {strides = array<i32>} : memref<1x1x128xf32, #tpu.memory_space<vmem>>, vector<1x1x128xf32>,
    %c0_i32_37 = arith.constant 0 : i32
    %85 = arith.cmpi eq, %arg1, %c0_i32_37 : i32
    %86 = arith.extui %85 : i1 to i32
    %c0_i32_38 = arith.constant 0 : i32
    %87 = arith.cmpi ne, %86, %c0_i32_38 : i32
    scf.if %87 {
      %c0_44 = arith.constant 0 : index
      %c0_45 = arith.constant 0 : index
      %96 = vector.load %arg9[%c0_44, %c0_45] : memref<8x1xf32, #tpu.memory_space<vmem>>, vector<8x1xf32>
      %97 = math.log %96 : vector<8x1xf32>
      %c0_46 = arith.constant 0 : index
      %c0_47 = arith.constant 0 : index
      %98 = vector.load %arg8[%c0_46, %c0_47] : memref<8x1xf32, #tpu.memory_space<vmem>>, vector<8x1xf32>
      %99 = arith.addf %97, %98 : vector<8x1xf32>
      %c0_48 = arith.constant 0 : index
      %c0_49 = arith.constant 0 : index
      %100 = vector.load %arg10[%c0_48, %c0_49] : memref<1x1xf32, #tpu.memory_space<vmem>>, vector<1x1xf32>
      %101 = vector.shape_cast %99 : vector<8x1xf32> to vector<1x8x1xf32>
      %cst_50 = arith.constant dense<0.000000e+00> : vector<1xf32>
      %102 = vector.multi_reduction <add>, %101, %cst_50 [1, 2] : vector<1x8x1xf32> to vector<1xf32>
      %103 = vector.shape_cast %102 : vector<1xf32> to vector<1x1x1xf32>
      %104 = vector.extract %103[0, 0, 0] : f32 from vector<1x1x1xf32>
      %105 = vector.broadcast %104 : f32 to vector<1x1xf32>
      %cst_51 = arith.constant 5.000000e-01 : f32
      %106 = vector.broadcast %cst_51 : f32 to vector<1x1xf32>
      %107 = arith.mulf %106, %105 : vector<1x1xf32>
      %108 = arith.addf %100, %107 : vector<1x1xf32>
      %c0_52 = arith.constant 0 : index
      %c0_53 = arith.constant 0 : index
      %109 = vector.load %arg10[%c0_52, %c0_53] : memref<1x1xf32, #tpu.memory_space<vmem>>, vector<1x1xf32>
      tpu.vector_store %arg10[%c0_52, %c0_53], %108 {strides = array<i32>} : memref<1x1xf32, #tpu.memory_space<vmem>>, vector<1x1xf32>,
    } else {
    }
    %c0_i32_39 = arith.constant 0 : i32
    %88 = arith.cmpi eq, %arg0, %c0_i32_39 : i32
    %89 = arith.extui %88 : i1 to i32
    %c0_i32_40 = arith.constant 0 : i32
    %90 = arith.cmpi ne, %89, %c0_i32_40 : i32
    scf.if %90 {
      %96 = arith.index_cast %arg1 : i32 to index
      %c0_44 = arith.constant 0 : index
      %c0_45 = arith.constant 0 : index
      %97 = vector.load %arg7[%96, %c0_44, %c0_45] : memref<1x1x128xf32, #tpu.memory_space<vmem>>, vector<1x1x128xf32>
      %98 = vector.shape_cast %97 : vector<1x1x128xf32> to vector<1x128xf32>
      %99 = math.log %98 : vector<1x128xf32>
      %100 = arith.index_cast %arg1 : i32 to index
      %c0_46 = arith.constant 0 : index
      %c0_47 = arith.constant 0 : index
      %101 = vector.load %arg6[%100, %c0_46, %c0_47] : memref<1x1x128xf32, #tpu.memory_space<vmem>>, vector<1x1x128xf32>
      %102 = vector.shape_cast %101 : vector<1x1x128xf32> to vector<1x128xf32>
      %103 = arith.addf %99, %102 : vector<1x128xf32>
      %cst_48 = arith.constant 0.000000e+00 : f32
      %104 = vector.broadcast %cst_48 : f32 to vector<1x128xf32>
      %105 = arith.select %30, %103, %104 : vector<1x128xi1>, vector<1x128xf32>
      %c0_49 = arith.constant 0 : index
      %c0_50 = arith.constant 0 : index
      %106 = vector.load %arg10[%c0_49, %c0_50] : memref<1x1xf32, #tpu.memory_space<vmem>>, vector<1x1xf32>
      %107 = vector.shape_cast %105 : vector<1x128xf32> to vector<1x1x128xf32>
      %cst_51 = arith.constant dense<0.000000e+00> : vector<1xf32>
      %108 = vector.multi_reduction <add>, %107, %cst_51 [1, 2] : vector<1x1x128xf32> to vector<1xf32>
      %109 = vector.shape_cast %108 : vector<1xf32> to vector<1x1x1xf32>
      %110 = vector.extract %109[0, 0, 0] : f32 from vector<1x1x1xf32>
      %111 = vector.broadcast %110 : f32 to vector<1x1xf32>
      %cst_52 = arith.constant 5.000000e-01 : f32
      %112 = vector.broadcast %cst_52 : f32 to vector<1x1xf32>
      %113 = arith.mulf %112, %111 : vector<1x1xf32>
      %114 = arith.addf %106, %113 : vector<1x1xf32>
      %c0_53 = arith.constant 0 : index
      %c0_54 = arith.constant 0 : index
      %115 = vector.load %arg10[%c0_53, %c0_54] : memref<1x1xf32, #tpu.memory_space<vmem>>, vector<1x1xf32>
      tpu.vector_store %arg10[%c0_53, %c0_54], %114 {strides = array<i32>} : memref<1x1xf32, #tpu.memory_space<vmem>>, vector<1x1xf32>,
    } else {
    }
    %c0_i32_41 = arith.constant 0 : i32
    %91 = arith.cmpi eq, %arg0, %c0_i32_41 : i32
    %c0_i32_42 = arith.constant 0 : i32
    %92 = arith.cmpi eq, %arg1, %c0_i32_42 : i32
    %93 = arith.andi %91, %92 : i1
    %94 = arith.extui %93 : i1 to i32
    %c0_i32_43 = arith.constant 0 : i32
    %95 = arith.cmpi ne, %94, %c0_i32_43 : i32
    scf.if %95 {
      %c0_44 = arith.constant 0 : index
      %c0_45 = arith.constant 0 : index
      %96 = vector.load %arg10[%c0_44, %c0_45] : memref<1x1xf32, #tpu.memory_space<vmem>>, vector<1x1xf32>
      %cst_46 = arith.constant 8.000000e+00 : f32
      %97 = vector.broadcast %cst_46 : f32 to vector<1x1xf32>
      %98 = arith.divf %96, %97 : vector<1x1xf32>
      %c0_47 = arith.constant 0 : index
      %c0_48 = arith.constant 0 : index
      %99 = vector.load %arg5[%c0_47, %c0_48] : memref<1x1xf32, #tpu.memory_space<vmem>>, vector<1x1xf32>
      tpu.vector_store %arg5[%c0_47, %c0_48], %98 {strides = array<i32>} : memref<1x1xf32, #tpu.memory_space<vmem>>, vector<1x1xf32>,
    } else {
    }
    return
  }
  func.func @transform_0(%arg0: i32, %arg1: i32) -> (i32, i32) {
    %c0_i32 = arith.constant 0 : i32
    %c0_i32_0 = arith.constant 0 : i32
    %c0_i32_1 = arith.constant 0 : i32
    return %c0_i32, %c0_i32_0 : i32, i32
  }
  func.func @transform_1(%arg0: i32, %arg1: i32) -> (i32, i32) {
    %c0_i32 = arith.constant 0 : i32
    %c0_i32_0 = arith.constant 0 : i32
    return %arg0, %c0_i32 : i32, i32
  }
  func.func @transform_2(%arg0: i32, %arg1: i32) -> (i32, i32) {
    %c0_i32 = arith.constant 0 : i32
    %c0_i32_0 = arith.constant 0 : i32
    return %arg1, %c0_i32 : i32, i32
  }
  func.func @transform_3(%arg0: i32, %arg1: i32) -> (i32, i32) {
    %c0_i32 = arith.constant 0 : i32
    %c0_i32_0 = arith.constant 0 : i32
    %c0_i32_1 = arith.constant 0 : i32
    return %c0_i32, %c0_i32_0 : i32, i32
  }
}

</mosaic_0001>

<bundles_post_ra>
// kernel: tpu_custom_call.1
= control target key start
LH: loop header
LB: loop body
LE: loop exit
PB: predicated region body
PF: predicated region fallthrough
CT: control target
= control target key end

     0   :  { %vm53_vm0 = vcmask 261120   ;;  %vm22_vm1 = vcmask 0   ;;  %v495_v2 = vmov 0.0|0.0   ;;  %vm32_vm3 = vcmask 7168   ;;  %s628_s0 = inlined_call_operand.<no memory space> [shape: f32[1,1], index: 0, kind: input, shape index: {}]   ;;  %s629_s1 = inlined_call_operand.vmem [shape: f32[8,32], index: 1, kind: input, shape index: {}]   ;;  %s630_s2 = inlined_call_operand.vmem [shape: f32[128,32], index: 2, kind: input, shape index: {}]   ;;  %s631_s3 = inlined_call_operand.hbm [shape: f32[1,1], index: 3, kind: output, shape index: {}]  }
   0x1   :  { %v37_v0 = vld [vmem:[%s630_s2] sm:$0xff]  ;;  %v38_v1 = vld [vmem:[%s630_s2 + $0x8] sm:$0xff]  ;;  %414 = vmatprep.subr.bf16.mxu0 %v495_v2  ;;  %vm529_vm2 = vmpackc.low %vm53_vm0, %vm53_vm0  ;;  %v496_v5 = vmov 0.0   ;;  %vm497_vm4 = vmmov 0  }
   0x2   :  { %v415_v3 = vpack.c.bf16 %v38_v1, %v37_v0  ;;  %23 = vst.msk [vmem:[#allocation6] sm:$0x1] %vm22_vm1, %v496_v5  ;;  %28 = vst [vmem:[#allocation3] sm:$0x1] %v496_v5  ;;  %411 = vmatprep.mubr.msk.f32.mxu0 %vm497_vm4, %v496_v5  ;;  %v39_v6 = vld [vmem:[%s630_s2 + $0x10] sm:$0xff]  ;;  %v40_v7 = vld [vmem:[%s630_s2 + $0x18] sm:$0xff] }
   0x3   :  { %34 = vst.msk [vmem:[#allocation5] sm:$0xff] %vm32_vm3, %v496_v5 }
   0x4   :  { %417 = vmatpush3.bf16.xpose.msk.msra.mxu0 %vm529_vm2, %v415_v3 }
   0x5   :  { %418 = vmatprep.subr.bf16.mxu0 %v495_v2 }
   0x6   :  { %9 = vsyncpa [#allocation9], 0  ;;  %v419_v8 = vpack.c.bf16 %v40_v7, %v39_v6  ;;  %v41_v9 = vld [vmem:[%s630_s2 + $0x20] sm:$0xff]  ;;  %v42_v10 = vld [vmem:[%s630_s2 + $0x28] sm:$0xff]  ;;  %v179_v28 = vlaneseq  ;;  %v498_v31 = vmov -1e+30   ;;  %v175_v32 = vstv %s628_s0 }
   0x7   :  { %v423_v11 = vpack.c.bf16 %v42_v10, %v41_v9  ;;  %v43_v12 = vld [vmem:[%s630_s2 + $0x30] sm:$0xff]  ;;  %v44_v13 = vld [vmem:[%s630_s2 + $0x38] sm:$0xff]  ;;  %v45_v15 = vld [vmem:[%s630_s2 + $0x40] sm:$0xff]  ;;  %27 = vst [vmem:[#allocation2] sm:$0x1] %v498_v31  ;;  %v499_v48 = vmov 0  }
   0x8   :  { %v427_v14 = vpack.c.bf16 %v44_v13, %v43_v12  ;;  %v46_v16 = vld [vmem:[%s630_s2 + $0x48] sm:$0xff]  ;;  %v47_v18 = vld [vmem:[%s630_s2 + $0x50] sm:$0xff]  ;;  %v48_v19 = vld [vmem:[%s630_s2 + $0x58] sm:$0xff]  ;;  %v597_v29 = vand.u32 127, %v179_v28  ;;  %v180_v30 = vshrl.u32 %v179_v28, 7  ;;  %33 = vst.msk [vmem:[#allocation4] sm:$0xff] %vm32_vm3, %v498_v31  ;;  %458 = vset.pattern.permute.xlu0 %v499_v48 }
   0x9   :  { %v431_v17 = vpack.c.bf16 %v46_v16, %v45_v15  ;;  %v435_v20 = vpack.c.bf16 %v48_v19, %v47_v18  ;;  %v49_v21 = vld [vmem:[%s630_s2 + $0x60] sm:$0xff]  ;;  %v50_v22 = vld [vmem:[%s630_s2 + $0x68] sm:$0xff]  ;;  %v51_v24 = vld [vmem:[%s630_s2 + $0x70] sm:$0xff]  ;;  %vm308_vm7 = vcmask 1040384   ;;  %s500_s21 = smov [#allocation8]  }
   0xa   :  { %v439_v23 = vpack.c.bf16 %v50_v22, %v49_v21  ;;  %v52_v25 = vld [vmem:[%s630_s2 + $0x78] sm:$0xff]  ;;  %v36_v27 = vld [vmem:[%s629_s1] sm:$0xff]  ;;  %vm197_vm5 = vcmp.eq.s32.totalorder %v180_v30, %v597_v29  ;;  %vm188_vm6 = vcmp.lt.s32.totalorder %v597_v29, 8  ;;  %v259_v45 = vsub.s32 0, %v180_v30  ;;  %v224_v10 = vld [vmem:[#allocation5] sm:$0xff]  ;;  %s337_s22 = sshll.u32 %s500_s21, 4  ;;  %s338_s22 = int_to_ptr.vmem [resolvable:$true] %s337_s22 }
   0xb   :  { %v443_v26 = vpack.c.bf16 %v52_v25, %v51_v24  ;;  %v251_v59 = vld [vmem:[#allocation3] sm:$0x1]  ;;  %s471_s23 = scalar_lea.vmem %s338_s22, 16  ;;  %s475_s24 = scalar_lea.vmem %s338_s22, 32 }
   0xc   :  { %421 = vmatpush3.bf16.xpose.msk.msra.mxu0 %vm529_vm2, %v419_v8  ;;  %p472_p0 = scmp.ne.s32.totalorder %s338_s22, %s471_s23  ;;  %p476_p1 = scmp.lt.s32.totalorder %s338_s22, %s338_s22 }
   0xd   :  { %422 = vmatprep.subr.bf16.mxu0 %v495_v2  ;;  %p477_p2 = scmp.lt.s32.totalorder %s475_s24, %s471_s23 }
   0xe   :  { %v243_v43 = vld [vmem:[#allocation2] sm:$0x1] }
   0xf   :  { %v220_v0 = vld [vmem:[#allocation4] sm:$0xff]  ;;  %p478_p3 = por %p477_p2, %p476_p1 }
  0x11   :  { %p479_p4 = pnand %p478_p3, %p472_p0 }
  0x14   :  { %425 = vmatpush3.bf16.xpose.msk.msra.mxu0 %vm529_vm2, %v423_v11 }
  0x15   :  { %426 = vmatprep.subr.bf16.mxu0 %v495_v2 }
  0x1c   :  { %429 = vmatpush3.bf16.xpose.msk.msra.mxu0 %vm529_vm2, %v427_v14 }
  0x1d   :  { %430 = vmatprep.subr.bf16.mxu0 %v495_v2 }
  0x24   :  { %433 = vmatpush3.bf16.xpose.msk.msra.mxu0 %vm529_vm2, %v431_v17 }
  0x25   :  { %434 = vmatprep.subr.bf16.mxu0 %v495_v2 }
  0x2c   :  { %437 = vmatpush3.bf16.xpose.msk.msra.mxu0 %vm529_vm2, %v435_v20 }
  0x2d   :  { %438 = vmatprep.subr.bf16.mxu0 %v495_v2 }
  0x34   :  { %441 = vmatpush3.bf16.xpose.msk.msra.mxu0 %vm529_vm2, %v439_v23 }
  0x35   :  { %442 = vmatprep.subr.bf16.mxu0 %v495_v2 }
  0x3c   :  { %445 = vmatpush3.bf16.xpose.msk.msra.mxu0 %vm529_vm2, %v443_v26 }
  0x43   :  { %412 = vmatmul.mubr.msk.f32.vlgmr.msra.gmra.mrb[0].mxu0 %vm53_vm0, %v36_v27 }
 0x116   :  { %v171_v33 = vpop.f32.mrb[0].mxu0 }
 0x117   :  { %v176_v34 = vmul.f32 %v175_v32, %v171_v33  ;;  %v413_v35 = vpop.f32.mrb[1].mxu0 }
 0x118   :  { %v199_v35 = vld [vmem:[#allocation6] sm:$0x1] }
 0x119   :  { %v219_v36 = vsel %vm188_vm6, %v176_v34, -1e+30  ;;  %v200_v37 = vsel %vm197_vm5, %v176_v34, 0.0 }
 0x11a   :  { %v244_v38 = vrot.slane %v219_v36, 4  ;;  %221 = vmax.xlane.f32.xlu0 %v219_v36 }
 0x11c   :  { %v245_v39 = vmax.f32 %v219_v36, %v244_v38 }
 0x11e   :  { %v246_v40 = vrot.slane %v245_v39, 2 }
 0x120   :  { %v247_v41 = vmax.f32 %v245_v39, %v246_v40 }
 0x122   :  { %v248_v42 = vrot.slane %v247_v41, 1 }
 0x124   :  { %v249_v44 = vmax.f32 %v247_v41, %v248_v42 }
 0x126   :  { %v250_v46 = vmax.f32 %v243_v43, %v249_v44 }
 0x128   :  { %v260_v47 = vrot.slane %v250_v46, %v259_v45  ;;  %273 = vst [vmem:[#allocation2] sm:$0x1] %v250_v46  ;;  %v252_v51 = vsub.f32 %v243_v43, %v250_v46 }
 0x12a   :  { %v262_v49 = vsub.f32 %v219_v36, %v260_v47  ;;  %v253_v52 = vmul.f32 1.442695, %v252_v51 }
 0x12c   :  { %v263_v50 = vmul.f32 1.442695, %v262_v49 }
 0x12e   :  { %459 = vpow2.f32 %v263_v50 }
 0x12f   :  { %461 = vpow2.f32 %v253_v52  ;;  %v304_v27 = vld [vmem:[#allocation2] sm:$0x1] }
 0x138   :  { %v460_v53 = vpop.eup %459 }
 0x139   :  { %v265_v54 = vrot.slane %v460_v53, 4  ;;  %v462_v58 = vpop.eup %461 }
 0x13a   :  { %v255_v62 = vmul.f32 %v462_v58, %v251_v59 }
 0x13b   :  { %v266_v55 = vadd.f32 %v460_v53, %v265_v54 }
 0x13d   :  { %v267_v56 = vrot.slane %v266_v55, 2 }
 0x13f   :  { %v268_v57 = vadd.f32 %v267_v56, %v266_v55 }
 0x141   :  { %v269_v60 = vrot.slane %v268_v57, 1 }
 0x143   :  { %v270_v61 = vadd.f32 %v269_v60, %v268_v57 }
 0x145   :  { %v271_v63 = vadd.f32 %v270_v61, %v255_v62 }
 0x147   :  { %272 = vst [vmem:[#allocation3] sm:$0x1] %v271_v63 }
 0x14e   :  { %v301_v14 = vld [vmem:[#allocation3] sm:$0x1] }
 0x1a7   :  { %v222_v1 = vpop.xlane.xlu0 %221 }
 0x1a8   :  { %v223_v2 = vmax.f32 %v220_v0, %v222_v1 }
 0x1aa   :  { %v225_v3 = vsub.f32 %v220_v0, %v223_v2  ;;  %242 = vst.msk [vmem:[#allocation4] sm:$0xff] %vm32_vm3, %v223_v2  ;;  %231 = vperm.xlu0 %458, %v223_v2  }
 0x1ac   :  { %v226_v8 = vmul.f32 1.442695, %v225_v3 }
 0x1b1   :  { %v280_v28 = vld [vmem:[#allocation4] sm:$0xff] }
 0x229   :  { %v232_v4 = vpop.permute.xlu0 %231 }
 0x22a   :  { %v234_v5 = vsub.f32 %v219_v36, %v232_v4 }
 0x22c   :  { %v235_v6 = vmul.f32 1.442695, %v234_v5 }
 0x22e   :  { %463 = vpow2.f32 %v235_v6 }
 0x22f   :  { %465 = vpow2.f32 %v226_v8 }
 0x230   :  { %467 = vlog2.f32 %v301_v14 }
 0x238   :  { %v464_v7 = vpop.eup %463 }
 0x239   :  { %237 = vadd.xlane.f32.xlu1 %v464_v7  ;;  %v466_v9 = vpop.eup %465 }
 0x23a   :  { %v228_v11 = vmul.f32 %v466_v9, %v224_v10  ;;  %v468_v23 = vpop.eup %467 }
 0x23b   :  { %v303_v24 = vmul.f32 0.6931472, %v468_v23 }
 0x23d   :  { %201 = vadd.xlane.f32.xlu1 %v200_v37  ;;  %v305_v30 = vadd.f32 %v304_v27, %v303_v24 }
 0x23f   :  { %v306_v33 = vsel %vm188_vm6, %v305_v30, 0.0 }
 0x240   :  { %v309_v34 = vsel %vm308_vm7, %v306_v33, 0.0 }
 0x2c6   :  { %v238_v12 = vpop.xlane.xlu1 %237 }
 0x2c7   :  { %v239_v13 = vadd.f32 %v238_v12, %v228_v11 }
 0x2c9   :  { %241 = vst.msk [vmem:[#allocation5] sm:$0xff] %vm32_vm3, %v239_v13 }
 0x2ca   :  { %v202_v15 = vpop.xlane.xlu1 %201 }
 0x2cb   :  { %v203_v16 = vrot.slane %v202_v15, 4 }
 0x2cd   :  { %v204_v17 = vadd.f32 %v203_v16, %v202_v15 }
 0x2cf   :  { %v205_v18 = vrot.slane %v204_v17, 2 }
 0x2d0   :  { %v277_v19 = vld [vmem:[#allocation5] sm:$0xff] }
 0x2d1   :  { %v206_v20 = vadd.f32 %v205_v18, %v204_v17  ;;  %469 = vlog2.f32 %v277_v19 }
 0x2d3   :  { %v207_v21 = vrot.slane %v206_v20, 1 }
 0x2d5   :  { %v208_v22 = vadd.f32 %v207_v21, %v206_v20 }
 0x2d7   :  { %446 = vpush %v208_v22 }
 0x2db   :  { %v470_v25 = vpop.eup %469 }
 0x2dc   :  { %v279_v26 = vmul.f32 0.6931472, %v470_v25 }
 0x2de   :  { %v281_v31 = vadd.f32 %v280_v28, %v279_v26 }
 0x2e0   :  { %v283_v32 = vsel %vm32_vm3, %v281_v31, 0.0 }
 0x2e1   :  { %284 = vadd.xlane.f32.xlu1 %v283_v32 }
 0x2e5   :  { %310 = vadd.xlane.f32.xlu1 %v309_v34 }
 0x308   :  { %s447_s0 = spop %446 }
 0x309   :  { %v210_v36 = vstv %s447_s0 }
 0x30a   :  { %v211_v37 = vsub.f32 %v199_v35, %v210_v36 }
 0x30c   :  { %213 = vst.msk [vmem:[#allocation6] sm:$0x1] %vm22_vm1, %v211_v37 }
 0x313   :  { %v282_v53 = vld [vmem:[#allocation6] sm:$0x1] }
 0x36e   :  { %v285_v38 = vpop.xlane.xlu1 %284 }
 0x36f   :  { %v286_v39 = vrot.slane %v285_v38, 4 }
 0x371   :  { %v287_v40 = vadd.f32 %v286_v39, %v285_v38 }
 0x372   :  { %v311_v41 = vpop.xlane.xlu1 %310 }
 0x373   :  { %v288_v42 = vrot.slane %v287_v40, 2  ;;  %v312_v43 = vrot.slane %v311_v41, 4 }
 0x375   :  { %v313_v44 = vadd.f32 %v312_v43, %v311_v41  ;;  %v289_v45 = vadd.f32 %v288_v42, %v287_v40 }
 0x377   :  { %v314_v46 = vrot.slane %v313_v44, 2  ;;  %v290_v29 = vrot.slane %v289_v45, 1 }
 0x379   :  { %v315_v47 = vadd.f32 %v314_v46, %v313_v44  ;;  %v291_v48 = vadd.f32 %v290_v29, %v289_v45 }
 0x37b   :  { %448 = vpush %v291_v48  ;;  %v316_v49 = vrot.slane %v315_v47, 1 }
 0x37d   :  { %v317_v50 = vadd.f32 %v316_v49, %v315_v47 }
 0x37f   :  { %450 = vpush %v317_v50 }
 0x3ac   :  { %s449_s1 = spop %448 }
 0x3ad   :  { %v293_v51 = vstv %s449_s1 }
 0x3ae   :  { %v294_v52 = vmul.f32 0.5, %v293_v51 }
 0x3b0   :  { %v295_v54 = vadd.f32 %v294_v52, %v282_v53  ;;  %s451_s20 = spop %450 }
 0x3b1   :  { %v319_v55 = vstv %s451_s20 }
 0x3b2   :  { %297 = vst.msk [vmem:[#allocation6] sm:$0x1] %vm22_vm1, %v295_v54  ;;  %v320_v56 = vmul.f32 0.5, %v319_v55 }
 0x3b9   :  { %v307_v57 = vld [vmem:[#allocation6] sm:$0x1] }
 0x3ba   :  { %v321_v58 = vadd.f32 %v320_v56, %v307_v57 }
 0x3bc   :  { %323 = vst.msk [vmem:[#allocation6] sm:$0x1] %vm22_vm1, %v321_v58 }
 0x3c3   :  { %v326_v59 = vld [vmem:[#allocation6] sm:$0x1] }
 0x3c4   :  { %v328_v60 = vmul.f32 0.125, %v326_v59 }
 0x3c6   :  { %330 = vst.msk [vmem:[#allocation8] sm:$0x1] %vm22_vm1, %v328_v60 }
 0x3c7   :  { %482 = shalt.err (!%p479_p4)
}
 0x3c8   :  { %s483_s27 = scalar_lea.hbm %s631_s3, 16 }
 0x3c9   :  { %p484_p5 = scmp.ne.s32.totalorder %s631_s3, %s483_s27  ;;  %p487_p6 = scmp.lt.u32.totalorder %s483_s27, %s631_s3 }
 0x3cb   :  { %p489_p7 = pnand %p487_p6, %p484_p5 }
 0x3cd   :  { %492 = shalt.err (!%p489_p7)
}
 0x3ce   :  { %340 = dma.vmem_to_hbm [thread:$0]  %s338_s22, 16, %s631_s3, [#allocation9]  }
 0x3cf   :  { %493 = dma.done.wait [#allocation9], 16  }
 0x3d0   :  { %494 = vsyncadd [#allocation9], 4294967280 }
 0x3d1   :  { %344 = vsyncpa [#allocation9], 1 }

</bundles_post_ra>
